<compile_context>
chip_gen: v5e
topology: v5e:2x2
jax: 0.10.0
libtpu: 0.0.40
codegen_flags: <defaults>
</compile_context>

<pallas_src>
import math
import functools

import jax
import jax.numpy as jnp
from jax.experimental import pallas as pl
from jax.experimental.pallas import tpu as pltpu

_VMEM_LIMIT = 32 * 1024 * 1024  # explicit scoped-VMEM budget (safe on v5e/v6e/v7x)


# ----------------------------------------------------------------------------
# Pallas kernels
# ----------------------------------------------------------------------------

def _enc_proj_kernel(p_ref, enc_w_ref, enc_b_ref, kvin_w_ref, kvin_b_ref,
                     pos_ref, kv_w_ref, kv_b_ref, o_ref, *, block_a):
    """Fused per-agent-block chain: conv-matmul+ReLU -> kv_in proj + cam pos -> [k|v] proj."""
    # encoder 3x3 s2 conv expressed as im2col matmul + ReLU
    feat = jnp.dot(p_ref[...], enc_w_ref[...], preferred_element_type=jnp.float32)
    feat = jnp.maximum(feat + enc_b_ref[...], 0.0).astype(jnp.bfloat16)
    # kv_in projection + camera positional embedding (shared across agents -> tiled in-reg)
    kv = jnp.dot(feat, kvin_w_ref[...], preferred_element_type=jnp.float32)
    pos = pos_ref[...]
    if block_a > 1:
        pos = jnp.concatenate([pos] * block_a, axis=0)
    kv = (kv + kvin_b_ref[...] + pos).astype(jnp.bfloat16)
    # fused k/v projection -> (block_a*Nk, 2*d) lane-dense store
    kvc = jnp.dot(kv, kv_w_ref[...], preferred_element_type=jnp.float32)
    o_ref[...] = (kvc + kv_b_ref[...]).astype(o_ref.dtype)


def encoder_kv_projection(patches, enc_w, enc_b, kvin_w, kvin_b, cam_pos,
                          kv_w, kv_b, *, n_agents, nk):
    """patches: (A*Nk, Kp) -> concatenated [k|v] tokens (A, Nk, 2d) in bf16."""
    M, Kp = patches.shape
    assert M == n_agents * nk
    C_enc = enc_w.shape[1]
    d = kvin_w.shape[1]
    d2 = kv_w.shape[1]
    block_a = 2 if (n_agents % 2 == 0 and n_agents >= 4) else 1
    grid_a = n_agents // block_a
    kvcat = pl.pallas_call(
        functools.partial(_enc_proj_kernel, block_a=block_a),
        out_shape=jax.ShapeDtypeStruct((M, d2), jnp.bfloat16),
        grid_spec=pltpu.PrefetchScalarGridSpec(
            num_scalar_prefetch=0,
            grid=(grid_a,),
            in_specs=[
                pl.BlockSpec((block_a * nk, Kp), lambda a: (a, 0)),
                pl.BlockSpec((Kp, C_enc), lambda a: (0, 0)),
                pl.BlockSpec((1, C_enc), lambda a: (0, 0)),
                pl.BlockSpec((C_enc, d), lambda a: (0, 0)),
                pl.BlockSpec((1, d), lambda a: (0, 0)),
                pl.BlockSpec((nk, d), lambda a: (0, 0)),
                pl.BlockSpec((d, d2), lambda a: (0, 0)),
                pl.BlockSpec((1, d2), lambda a: (0, 0)),
            ],
            out_specs=pl.BlockSpec((block_a * nk, d2), lambda a: (a, 0)),
        ),
        compiler_params=pltpu.CompilerParams(
            dimension_semantics=("parallel",),
            vmem_limit_bytes=_VMEM_LIMIT),
    )(patches.astype(jnp.bfloat16), enc_w.astype(jnp.bfloat16),
      enc_b.reshape(1, -1).astype(jnp.float32),
      kvin_w.astype(jnp.bfloat16), kvin_b.reshape(1, -1).astype(jnp.float32),
      cam_pos.astype(jnp.float32),
      kv_w.astype(jnp.bfloat16), kv_b.reshape(1, -1).astype(jnp.float32))
    return kvcat.reshape(n_agents, nk, d2)


def _attn_bev_kernel(*refs, scale, d, fuse_up):
    """Batched-agent BEV cross-attention fused with output proj (+ optional resize proj)."""
    if fuse_up:
        q_ref, kv_ref, ow_ref, ob_ref, up_w_ref, up_b_ref, o_ref = refs
    else:
        q_ref, kv_ref, ow_ref, ob_ref, o_ref = refs
    ba = kv_ref.shape[0]
    nq = q_ref.shape[0]
    q = jnp.broadcast_to(q_ref[...][None], (ba, nq, d))   # shared query, resident block
    kv = kv_ref[...]
    k = kv[:, :, :d]
    v = kv[:, :, d:]
    s = jnp.einsum('aqd,akd->aqk', q, k,
                   preferred_element_type=jnp.float32) * scale
    m = jnp.max(s, axis=-1, keepdims=True)
    p = jnp.exp(s - m)
    l = jnp.sum(p, axis=-1, keepdims=True)
    p = p * pl.reciprocal(l, approx=True)                 # EUP slot; frees VALU
    attn = jnp.einsum('aqk,akd->aqd', p.astype(jnp.bfloat16), v,
                      preferred_element_type=jnp.float32)
    attn2 = attn.reshape(ba * nq, d).astype(jnp.bfloat16)
    bev = jnp.dot(attn2, ow_ref[...], preferred_element_type=jnp.float32)
    bev = bev + ob_ref[...]
    if fuse_up:
        # ConvTranspose2d(128,128,k=2,s=2) == per-pixel matmul to 4*C lanes (pixel-shuffle later)
        bev = jnp.dot(bev.astype(jnp.bfloat16), up_w_ref[...],
                      preferred_element_type=jnp.float32) + up_b_ref[...]
    o_ref[...] = bev.reshape(ba, nq, -1).astype(o_ref.dtype)


def bev_cross_attention(bev_query, kvcat, out_w, out_b, up_w=None, up_b=None,
                        *, block_a=None):
    """bev_query: (Nq, d), kvcat: (A, Nk, 2d) -> (A, Nq, C) f32, C=512 if resize fused."""
    A, Nk, d2 = kvcat.shape
    Nq, d = bev_query.shape
    assert d2 == 2 * d
    C = out_w.shape[1]
    fuse_up = up_w is not None
    C_out = up_w.shape[1] if fuse_up else C
    if block_a is None:
        block_a = 2 if (A % 2 == 0 and A >= 4) else 1
    scale = 1.0 / math.sqrt(d)

    in_specs = [
        pl.BlockSpec((Nq, d), lambda a: (0, 0)),              # shared BEV query
        pl.BlockSpec((block_a, Nk, d2), lambda a: (a, 0, 0)),
        pl.BlockSpec((d, C), lambda a: (0, 0)),
        pl.BlockSpec((1, C), lambda a: (0, 0)),
    ]
    args = [bev_query.astype(jnp.bfloat16), kvcat.astype(jnp.bfloat16),
            out_w.astype(jnp.bfloat16), out_b.reshape(1, -1).astype(jnp.float32)]
    if fuse_up:
        in_specs += [pl.BlockSpec((C, C_out), lambda a: (0, 0)),
                     pl.BlockSpec((1, C_out), lambda a: (0, 0))]
        args += [up_w.astype(jnp.bfloat16), up_b.reshape(1, -1).astype(jnp.float32)]

    return pl.pallas_call(
        functools.partial(_attn_bev_kernel, scale=scale, d=d, fuse_up=fuse_up),
        out_shape=jax.ShapeDtypeStruct((A, Nq, C_out), jnp.float32),
        grid_spec=pltpu.PrefetchScalarGridSpec(
            num_scalar_prefetch=0,
            grid=(A // block_a,),
            in_specs=in_specs,
            out_specs=pl.BlockSpec((block_a, Nq, C_out), lambda a: (a, 0, 0)),
        ),
        compiler_params=pltpu.CompilerParams(
            dimension_semantics=("parallel",),
            vmem_limit_bytes=_VMEM_LIMIT),
    )(*args)


# ----------------------------------------------------------------------------
# JAX glue (reshapes, im2col, regroup, parameter setup)
# ----------------------------------------------------------------------------

def _im2col_3x3_s2(imgs, pad_to=32):
    """imgs: (N, C, H, W) NCHW -> patches (N*Ho*Wo, max(C*9, pad_to)); 3x3, stride 2, pad 1."""
    # TODO(synk): im2col is done as XLA glue (not inside the kernel); for large images an
    #             in-kernel 9-shifted-matmul conv would cut encoder HBM reads ~9x.
    N, C, H, W = imgs.shape
    Ho, Wo = H // 2, W // 2
    xp = jnp.pad(imgs, ((0, 0), (0, 0), (1, 1), (1, 1)))
    cols = []
    for di in range(3):
        for dj in range(3):
            cols.append(xp[:, :, di:di + H:2, dj:dj + W:2])
    p = jnp.stack(cols, axis=2)                        # (N, C, 9, Ho, Wo)
    p = p.reshape(N, C * 9, Ho, Wo).transpose(0, 2, 3, 1).reshape(N * Ho * Wo, C * 9)
    if pad_to and pad_to > C * 9:                      # pad K to a lane-friendly width
        p = jnp.pad(p, ((0, 0), (0, pad_to - C * 9)))
    return p


def regroup(dense_feature, record_len, max_len):
    """Mirror of opencood.models.fuse_utils.regroup (static record_len)."""
    _, C, H, W = dense_feature.shape
    feats, mask = [], []
    start = 0
    for n in record_len:
        sf = dense_feature[start:start + n]
        start += n
        pad = max_len - n
        if pad > 0:
            sf = jnp.concatenate([sf, jnp.zeros((pad, C, H, W), sf.dtype)], axis=0)
        feats.append(sf.reshape(-1, H, W))             # (max_cav*C, H, W)
        mask.append([1] * n + [0] * pad)
    return jnp.stack(feats), jnp.asarray(mask, jnp.int32)


def init_params(key, cfg, num_cams, img_hw):
    C_in, C_enc, d = cfg['c_in'], cfg['c_enc'], cfg['d_model']
    C_bev = 128
    Ho = img_hw // 2
    Nk = num_cams * Ho * Ho
    Nq = cfg['bev_hw'] ** 2
    ks = jax.random.split(key, 8)
    s = 0.05
    return {
        'enc_w':     s * jax.random.normal(ks[0], (C_in * 9, C_enc), jnp.float32),
        'enc_b':     jnp.zeros((C_enc,), jnp.float32),
        'kv_in_w':   s * jax.random.normal(ks[1], (C_enc, d), jnp.float32),
        'kv_in_b':   jnp.zeros((d,), jnp.float32),
        'cam_pos':   s * jax.random.normal(ks[2], (Nk, d), jnp.float32),
        # fused [k | v] projection: (d, 2d) so the stored output is 2*d (=256) lanes wide
        'kv_w':      s * jax.random.normal(ks[3], (d, 2 * d), jnp.float32),
        'kv_b':      jnp.zeros((2 * d,), jnp.float32),
        'bev_query': s * jax.random.normal(ks[4], (Nq, d), jnp.float32),
        'out_w':     s * jax.random.normal(ks[5], (d, C_bev), jnp.float32),
        'out_b':     jnp.zeros((C_bev,), jnp.float32),
        # ConvTranspose2d(128,128,k=2,s=2): flattened as (Cin, (di*2+dj)*Cout + co)
        # TODO(synk): this flattening must be re-derived from PyTorch's (Cin,Cout,kH,kW)
        #             layout if real checkpoint weights are ever loaded.
        'up_w':      s * jax.random.normal(ks[6], (C_bev, 4 * C_bev), jnp.float32),
        'up_b':      jnp.zeros((C_bev,), jnp.float32),
    }


def camera_bev_forward(params, batch_dict, cfg):
    x = batch_dict['inputs']                 # (b, l, m, C, H, W), NCHW per camera
    record_len = batch_dict['record_len']    # static python list, sum == b*l
    b, l, m, C, H, W = x.shape
    A = b * l
    Ho, Wo = H // 2, W // 2
    C_bev = 128
    bev_h = bev_w = cfg['bev_hw']
    Nq, Nk = bev_h * bev_w, m * Ho * Wo

    # --- encoder + FAX token/kv projections: one fused Pallas kernel (2 agents / step) ---
    imgs = x.reshape(A * m, C, H, W)
    patches = _im2col_3x3_s2(imgs)                                   # (A*Nk, 32)
    Kp = patches.shape[1]
    enc_w = jnp.pad(params['enc_w'], ((0, Kp - C * 9), (0, 0)))      # zero-pad K rows
    kvcat = encoder_kv_projection(
        patches, enc_w, params['enc_b'],
        params['kv_in_w'], params['kv_in_b'], params['cam_pos'],
        params['kv_w'], params['kv_b'], n_agents=A, nk=Nk)           # (A, Nk, 2d) bf16

    # --- FAX BEV cross-attention; output proj (+ resize ConvTranspose) fused in-kernel ---
    # fax output (A,1,128,bh,bw) -> squeeze(1): kept in token-major (A, Nq, C) form.
    if cfg['resize'] > 0:
        up_bias = jnp.tile(params['up_b'], 4)                        # bias per (di,dj,co)
        up = bev_cross_attention(params['bev_query'], kvcat,
                                 params['out_w'], params['out_b'],
                                 params['up_w'], up_bias)            # (A, Nq, 512) f32
        up = up.reshape(A, bev_h, bev_w, 2, 2, C_bev)
        up = up.transpose(0, 1, 3, 2, 4, 5).reshape(A, 2 * bev_h, 2 * bev_w, C_bev)
        cam = up.transpose(0, 3, 1, 2)                               # (A, 128, 2bh, 2bw)
    else:
        bev_tok = bev_cross_attention(params['bev_query'], kvcat,
                                      params['out_w'], params['out_b'])  # (A, Nq, 128) f32
        cam = bev_tok.reshape(A, bev_h, bev_w, C_bev).transpose(0, 3, 1, 2)

    # TODO(synk): NaiveCompressor branch not exercised (config['compression'] == 0).

    return regroup(cam, record_len, cfg['max_cav'])


# ----------------------------------------------------------------------------
# main
# ----------------------------------------------------------------------------

if __name__ == "__main__":
    cfg = dict(max_cav=3, resize=1, compression=0,
               c_in=3, c_enc=128, d_model=128, bev_hw=8)

    b, l, m, C, H, W = 2, 2, 2, 3, 16, 16
    key = jax.random.PRNGKey(0)
    kx, kp = jax.random.split(key)
    x = jax.random.normal(kx, (b, l, m, C, H, W), jnp.float32)
    record_len = [2, 2]                       # sums to b*l agents

    params = init_params(kp, cfg, num_cams=m, img_hw=H)
    batch_dict = {'inputs': x, 'record_len': record_len}

    feats, mask = camera_bev_forward(params, batch_dict, cfg)
    jax.block_until_ready(feats)
    jax.block_until_ready(mask)

    assert feats.shape == (len(record_len), cfg['max_cav'] * 128,
                           2 * cfg['bev_hw'], 2 * cfg['bev_hw']), feats.shape
    assert mask.shape == (len(record_len), cfg['max_cav']), mask.shape
    print("KERNEL_OK")
</pallas_src>

<mosaic_0001>
module attributes {stable_mosaic.version = 11 : i64} {
  func.func @_enc_proj_kernel(%arg0: i32, %arg1: memref<256x32xbf16, #tpu.memory_space<vmem>>, %arg2: memref<32x128xbf16, #tpu.memory_space<vmem>>, %arg3: memref<1x128xf32, #tpu.memory_space<vmem>>, %arg4: memref<128x128xbf16, #tpu.memory_space<vmem>>, %arg5: memref<1x128xf32, #tpu.memory_space<vmem>>, %arg6: memref<128x128xf32, #tpu.memory_space<vmem>>, %arg7: memref<128x256xbf16, #tpu.memory_space<vmem>>, %arg8: memref<1x256xf32, #tpu.memory_space<vmem>>, %arg9: memref<256x256xbf16, #tpu.memory_space<vmem>>) attributes {dimension_semantics = [#tpu.dimension_semantics<parallel>], iteration_bounds = array<i64: 2>, scalar_prefetch = 0 : i64, scratch_operands = 0 : i64, tpu.core_type = #tpu.core_type<tc>, window_params = [{transform_indices = @transform_0, window_bounds = array<i64: 256, 32>}, {pipeline_mode = #tpu.pipeline_mode<synchronous>, transform_indices = @transform_1, window_bounds = array<i64: 32, 128>}, {pipeline_mode = #tpu.pipeline_mode<synchronous>, transform_indices = @transform_2, window_bounds = array<i64: 1, 128>}, {pipeline_mode = #tpu.pipeline_mode<synchronous>, transform_indices = @transform_3, window_bounds = array<i64: 128, 128>}, {pipeline_mode = #tpu.pipeline_mode<synchronous>, transform_indices = @transform_4, window_bounds = array<i64: 1, 128>}, {pipeline_mode = #tpu.pipeline_mode<synchronous>, transform_indices = @transform_5, window_bounds = array<i64: 128, 128>}, {pipeline_mode = #tpu.pipeline_mode<synchronous>, transform_indices = @transform_6, window_bounds = array<i64: 128, 256>}, {pipeline_mode = #tpu.pipeline_mode<synchronous>, transform_indices = @transform_7, window_bounds = array<i64: 1, 256>}, {transform_indices = @transform_8, window_bounds = array<i64: 256, 256>}]} {
    %c0 = arith.constant 0 : index
    %c0_0 = arith.constant 0 : index
    %0 = vector.load %arg1[%c0, %c0_0] : memref<256x32xbf16, #tpu.memory_space<vmem>>, vector<256x32xbf16>
    %c0_1 = arith.constant 0 : index
    %c0_2 = arith.constant 0 : index
    %1 = vector.load %arg2[%c0_1, %c0_2] : memref<32x128xbf16, #tpu.memory_space<vmem>>, vector<32x128xbf16>
    %cst = arith.constant dense<0.000000e+00> : vector<256x128xf32>
    %2 = tpu.matmul %0, %1, %cst {dimension_numbers = #tpu.dot_dimension_numbers<[1], [0], [0], [1], [0, 0, 1, 1], [], []>} : vector<256x32xbf16>, vector<32x128xbf16>, vector<256x128xf32> -> vector<256x128xf32>
    %c0_3 = arith.constant 0 : index
    %c0_4 = arith.constant 0 : index
    %3 = vector.load %arg3[%c0_3, %c0_4] : memref<1x128xf32, #tpu.memory_space<vmem>>, vector<1x128xf32>
    %4 = vector.broadcast %3 : vector<1x128xf32> to vector<256x128xf32>
    %5 = arith.addf %2, %4 : vector<256x128xf32>
    %cst_5 = arith.constant 0.000000e+00 : f32
    %6 = vector.broadcast %cst_5 : f32 to vector<256x128xf32>
    %7 = arith.maximumf %5, %6 : vector<256x128xf32>
    %8 = arith.truncf %7 : vector<256x128xf32> to vector<256x128xbf16>
    %c0_6 = arith.constant 0 : index
    %c0_7 = arith.constant 0 : index
    %9 = vector.load %arg4[%c0_6, %c0_7] : memref<128x128xbf16, #tpu.memory_space<vmem>>, vector<128x128xbf16>
    %cst_8 = arith.constant dense<0.000000e+00> : vector<256x128xf32>
    %10 = tpu.matmul %8, %9, %cst_8 {dimension_numbers = #tpu.dot_dimension_numbers<[1], [0], [0], [1], [0, 0, 1, 1], [], []>} : vector<256x128xbf16>, vector<128x128xbf16>, vector<256x128xf32> -> vector<256x128xf32>
    %c0_9 = arith.constant 0 : index
    %c0_10 = arith.constant 0 : index
    %11 = vector.load %arg6[%c0_9, %c0_10] : memref<128x128xf32, #tpu.memory_space<vmem>>, vector<128x128xf32>
    %12 = tpu.concatenate %11, %11 in 0 : vector<128x128xf32>, vector<128x128xf32> -> vector<256x128xf32>
    %c0_11 = arith.constant 0 : index
    %c0_12 = arith.constant 0 : index
    %13 = vector.load %arg5[%c0_11, %c0_12] : memref<1x128xf32, #tpu.memory_space<vmem>>, vector<1x128xf32>
    %14 = vector.broadcast %13 : vector<1x128xf32> to vector<256x128xf32>
    %15 = arith.addf %10, %14 : vector<256x128xf32>
    %16 = arith.addf %15, %12 : vector<256x128xf32>
    %17 = arith.truncf %16 : vector<256x128xf32> to vector<256x128xbf16>
    %c0_13 = arith.constant 0 : index
    %c0_14 = arith.constant 0 : index
    %18 = vector.load %arg7[%c0_13, %c0_14] : memref<128x256xbf16, #tpu.memory_space<vmem>>, vector<128x256xbf16>
    %cst_15 = arith.constant dense<0.000000e+00> : vector<256x256xf32>
    %19 = tpu.matmul %17, %18, %cst_15 {dimension_numbers = #tpu.dot_dimension_numbers<[1], [0], [0], [1], [0, 0, 1, 1], [], []>} : vector<256x128xbf16>, vector<128x256xbf16>, vector<256x256xf32> -> vector<256x256xf32>
    %c0_16 = arith.constant 0 : index
    %c0_17 = arith.constant 0 : index
    %20 = vector.load %arg8[%c0_16, %c0_17] : memref<1x256xf32, #tpu.memory_space<vmem>>, vector<1x256xf32>
    %21 = vector.broadcast %20 : vector<1x256xf32> to vector<256x256xf32>
    %22 = arith.addf %19, %21 : vector<256x256xf32>
    %23 = arith.truncf %22 : vector<256x256xf32> to vector<256x256xbf16>
    %c0_18 = arith.constant 0 : index
    %c0_19 = arith.constant 0 : index
    %24 = vector.load %arg9[%c0_18, %c0_19] : memref<256x256xbf16, #tpu.memory_space<vmem>>, vector<256x256xbf16>
    tpu.vector_store %arg9[%c0_18, %c0_19], %23 {strides = array<i32>} : memref<256x256xbf16, #tpu.memory_space<vmem>>, vector<256x256xbf16>,
    return
  }
  func.func @transform_0(%arg0: i32) -> (i32, i32) {
    %c0_i32 = arith.constant 0 : i32
    %c0_i32_0 = arith.constant 0 : i32
    return %arg0, %c0_i32 : i32, i32
  }
  func.func @transform_1(%arg0: i32) -> (i32, i32) {
    %c0_i32 = arith.constant 0 : i32
    %c0_i32_0 = arith.constant 0 : i32
    %c0_i32_1 = arith.constant 0 : i32
    return %c0_i32, %c0_i32_0 : i32, i32
  }
  func.func @transform_2(%arg0: i32) -> (i32, i32) {
    %c0_i32 = arith.constant 0 : i32
    %c0_i32_0 = arith.constant 0 : i32
    %c0_i32_1 = arith.constant 0 : i32
    return %c0_i32, %c0_i32_0 : i32, i32
  }
  func.func @transform_3(%arg0: i32) -> (i32, i32) {
    %c0_i32 = arith.constant 0 : i32
    %c0_i32_0 = arith.constant 0 : i32
    %c0_i32_1 = arith.constant 0 : i32
    return %c0_i32, %c0_i32_0 : i32, i32
  }
  func.func @transform_4(%arg0: i32) -> (i32, i32) {
    %c0_i32 = arith.constant 0 : i32
    %c0_i32_0 = arith.constant 0 : i32
    %c0_i32_1 = arith.constant 0 : i32
    return %c0_i32, %c0_i32_0 : i32, i32
  }
  func.func @transform_5(%arg0: i32) -> (i32, i32) {
    %c0_i32 = arith.constant 0 : i32
    %c0_i32_0 = arith.constant 0 : i32
    %c0_i32_1 = arith.constant 0 : i32
    return %c0_i32, %c0_i32_0 : i32, i32
  }
  func.func @transform_6(%arg0: i32) -> (i32, i32) {
    %c0_i32 = arith.constant 0 : i32
    %c0_i32_0 = arith.constant 0 : i32
    %c0_i32_1 = arith.constant 0 : i32
    return %c0_i32, %c0_i32_0 : i32, i32
  }
  func.func @transform_7(%arg0: i32) -> (i32, i32) {
    %c0_i32 = arith.constant 0 : i32
    %c0_i32_0 = arith.constant 0 : i32
    %c0_i32_1 = arith.constant 0 : i32
    return %c0_i32, %c0_i32_0 : i32, i32
  }
  func.func @transform_8(%arg0: i32) -> (i32, i32) {
    %c0_i32 = arith.constant 0 : i32
    %c0_i32_0 = arith.constant 0 : i32
    return %arg0, %c0_i32 : i32, i32
  }
}

</mosaic_0001>

<bundles_post_ra>
// kernel: tpu_custom_call.1
= control target key start
LH: loop header
LB: loop body
LE: loop exit
PB: predicated region body
PF: predicated region fallthrough
CT: control target
= control target key end

     0   :  { %13 = vsyncpa [#allocation3], 0  ;;  %s2374_s0 = inlined_call_operand.vmem [shape: bf16[512,32], index: 0, kind: input, shape index: {}]   ;;  %s2375_s1 = inlined_call_operand.hbm [shape: bf16[32,128], index: 1, kind: input, shape index: {}]   ;;  %s2376_s2 = inlined_call_operand.hbm [shape: f32[1,128], index: 2, kind: input, shape index: {}]   ;;  %s2377_s3 = inlined_call_operand.vmem [shape: bf16[128,128], index: 3, kind: input, shape index: {}]   ;;  %s2378_s4 = inlined_call_operand.vmem [shape: f32[1,128], index: 4, kind: input, shape index: {}]   ;;  %s2379_s5 = inlined_call_operand.vmem [shape: f32[128,128], index: 5, kind: input, shape index: {}]   ;;  %s2380_s6 = inlined_call_operand.vmem [shape: bf16[128,256], index: 6, kind: input, shape index: {}]   ;;  %s2381_s7 = inlined_call_operand.vmem [shape: f32[1,256], index: 7, kind: input, shape index: {}]   ;;  %s2382_s8 = inlined_call_operand.hbm [shape: bf16[512,256], index: 8, kind: output, shape index: {}]  }
   0x1   :  { %14 = vsyncpa [#allocation6], 0 }
   0x2   :  { %15 = vsyncpa [#allocation4], 0 }
   0x3   :  { %17 = vsyncpa [#allocation4 + $0x1], 0  ;;  %s1818_s27 = smov 0   ;;  %s1820_s28 = smov 0  }
   0x4   :  { %s1822_s29 = smov 0   ;;  %s1824_s30 = smov 0  }
   0x5 LB: > { %s1839_s9 = sadd.s32 4294967295, %s1765_s30   ;;  %s1324_s10 = sadd.s32 4294967294, %s1765_s30   ;;  %s1765_s30 = sphi %s1824_s30, %s2389_s30   ;;  %s1761_s29 = sphi %s1822_s29, %s2388_s29   ;;  %s1757_s28 = sphi %s1820_s28, %s2387_s28   ;;  %s1753_s27 = sphi %s1818_s27, %s2386_s27  }
   0x6   : > { %s1843_s11 = sadd.s32 1, %s1765_s30   ;;  %s203_s12 = sadd.s32 1, %s1761_s29 }
   0x7   : > { %s200_s13 = ssub.s32 %s1765_s30, %s1843_s11  ;;  %p213_p0 = scmp.ne.s32.totalorder %s1761_s29, %s1757_s28 }
   0x8   : > { %p201_p1 = scmp.eq.s32.totalorder %s200_s13, 0  ;;  %p214_p2 = scmp.eq.s32.totalorder %s1839_s9, 1 }
   0x9   : > { %p219_p3 = scmp.ne.s32.totalorder %s1757_s28, %s1753_s27  ;;  %p220_p4 = scmp.eq.s32.totalorder %s1324_s10, 1 }
   0xa   : > { %s1854_s14 = scalar_select %p201_p1, %s1761_s29, %s203_s12  }
   0xb   : > { %p1856_p5 = por %p214_p2, %p213_p0  ;;  %p1860_p6 = por %p220_p4, %p219_p3 }
   0xc   : > { %p1325_p7 = scmp.ge.s32.totalorder %s1765_s30, 1  ;;  %p227_p8 = scmp.lt.s32.totalorder %s1765_s30, 3 }
   0xd   : > { %p1590_p9 = scmp.eq.s32.totalorder %s1839_s9, 0  ;;  %s238_s20 = sshll.u32 %s2375_s1, 4  ;;  %s239_s20 = int_to_ptr.hbm [resolvable:$true] %s238_s20 }
   0xe   : > { %p1867_p10 = pnand %p1325_p7, %p227_p8  ;;  %s1767_s21 = smov [#allocation2]  }
   0xf   : > { %s240_s22 = sshll.u32 %s1767_s21, 4  ;;  %s253_s25 = sshll.u32 %s2376_s2, 4  ;;  %s241_s22 = int_to_ptr.vmem [resolvable:$true] %s240_s22  ;;  %s254_s25 = int_to_ptr.hbm [resolvable:$true] %s253_s25 }
  0x10   : > { %p1579_p11 = pneg %p1867_p10  ;;  %s1768_s26 = smov 64  }
  0x11   : > { %s1769_s10 = smov 4   ;;  %s1770_s12 = smov [#allocation5]  }
  0x12   : > { %p1580_p12 = pnand %p1590_p9, %p1579_p11  ;;  %s255_s13 = sshll.u32 %s1770_s12, 4  ;;  %s256_s13 = int_to_ptr.vmem [resolvable:$true] %s255_s13 }
  0x13   : > { %292 = sbr.rel (%p1867_p10) target bundleno = 703 (0x2bf), region = 52 }
  0x14   : > { %1582 = dma.hbm_to_vmem [thread:$0]  (!%p1580_p12), %s239_s20, 256, %s241_s22, [#allocation3], %s1768_s26, %s1768_s26, %s1769_s10  }
  0x15   : > { %1585 = dma.hbm_to_vmem [thread:$0]  (!%p1580_p12), %s254_s25, 16, %s256_s13, [#allocation6]  }
  0x18   : > { %1740 = dma.done.wait (%p1590_p9), [#allocation3], 256  }
  0x19   : > { %1742 = vsyncadd (%p1590_p9), [#allocation3], 4294967040 }
  0x1a   : > { %1744 = dma.done.wait (%p1590_p9), [#allocation6], 16  }
  0x1b   : > { %1746 = vsyncadd (%p1590_p9), [#allocation6], 4294967280  ;;  %s1333_s18 = sshll.u32 %s1839_s9, 5  ;;  %v1542_v0 = vld [vmem:[#allocation2 + $0x8] sm:$0xff]  ;;  %v1541_v1 = vld [vmem:[#allocation2] sm:$0xff]  ;;  %vm472_vm0 = vcmask 261120  }
  0x1c   : > { %p333_p13 = scmp.lt.s32.totalorder %s1333_s18, 63  ;;  %527 = vmatpush.bf16.msra.mxu0 %v1542_v0  ;;  %v1550_v7 = vld [vmem:[%s2377_s3 + $0x38] sm:$0xff]  ;;  %v1549_v9 = vld [vmem:[%s2377_s3 + $0x30] sm:$0xff]  ;;  %v1548_v10 = vld [vmem:[%s2377_s3 + $0x28] sm:$0xff]  ;;  %s329_s26 = sand.u32 1, %s1757_s28  }
  0x1d   : > { %742 = vmatpush.bf16.msra.mxu1 %v1550_v7  ;;  %v1547_v11 = vld [vmem:[%s2377_s3 + $0x20] sm:$0xff]  ;;  %v1546_v12 = vld [vmem:[%s2377_s3 + $0x18] sm:$0xff]  ;;  %v1545_v14 = vld [vmem:[%s2377_s3 + $0x10] sm:$0xff]  ;;  %s1332_s10 = sshll.u32 %s329_s26, 8  ;;  %s1568_s13 = sshll.u32 %s1839_s9, 8 }
  0x1e   : > { %s2391_s18 = smov (!%p333_p13, %s1333_s18), 63  ;;  %v1544_v15 = vld [vmem:[%s2377_s3 + $0x8] sm:$0xff]  ;;  %v1543_v16 = vld [vmem:[%s2377_s3] sm:$0xff]  ;;  %v1938_v20 = vld [vmem:[#allocation5] ss:$0 sm:$0xff]  ;;  %s2217_s12 = scalar_lea.vmem [#allocation7], %s1332_s10 }
  0x1f   : > { %s1334_s19 = sshll.u32 %s2391_s18, 2  ;;  %v1513_v0 = vld [vmem:[%s2380_s6 + $0x70] sm:$0xf]  ;;  %s1236_s17 = scalar_lea.hbm %s2382_s8, %s1568_s13 }
  0x20   : > { %s1895_s21 = scalar_lea.vmem %s2374_s0, %s1334_s19  ;;  %528 = vmatpush.bf16.msra.mxu0 %v1541_v1  ;;  %v1566_v1 = vld [vmem:[%s2380_s6 + $0x74] sm:$0xf0]  ;;  %s1237_s20 = sshll.u32 %s2217_s12, 4  ;;  %s1238_s20 = int_to_ptr.vmem [resolvable:$true] %s1237_s20 }
  0x21   : > { %v1525_v2 = vld [vmem:[%s1895_s21] sm:$0xff]  ;;  %v1526_v3 = vld [vmem:[%s1895_s21 + $0x8] sm:$0xff]  ;;  %v1527_v4 = vld [vmem:[%s1895_s21 + $0x10] sm:$0xff]  ;;  %743 = vmatpush.bf16.msra.mxu1 %v1549_v9  ;;  %s1224_s9 = scalar_lea.sflag [#allocation4], %s329_s26  ;;  %s1715_s10 = scalar_lea.hbm %s2382_s8, 512 }
  0x22   : > { %v1528_v5 = vld [vmem:[%s1895_s21 + $0x18] sm:$0xff]  ;;  %v1529_v6 = vld [vmem:[%s1895_s21 + $0x20] sm:$0xff]  ;;  %v1530_v8 = vld [vmem:[%s1895_s21 + $0x28] sm:$0xff] }
  0x23   : > { %1407 = vmatmul.msk.bf16.vlgmr.msra.gmra.mxu0 %vm472_vm0, %v1525_v2  ;;  %v1531_v13 = vld [vmem:[%s1895_s21 + $0x30] sm:$0xff]  ;;  %v1532_v17 = vld [vmem:[%s1895_s21 + $0x38] sm:$0xff]  ;;  %v1533_v18 = vld [vmem:[%s1895_s21 + $0x40] sm:$0xff] }
  0x24   : > { %v1534_v27 = vld [vmem:[%s1895_s21 + $0x48] sm:$0xff]  ;;  %v1535_v35 = vld [vmem:[%s1895_s21 + $0x50] sm:$0xff]  ;;  %v1536_v43 = vld [vmem:[%s1895_s21 + $0x58] sm:$0xff] }
  0x25   : > { %744 = vmatpush.bf16.msra.mxu1 %v1548_v10  ;;  %v1537_v51 = vld [vmem:[%s1895_s21 + $0x60] sm:$0xff]  ;;  %v1538_v59 = vld [vmem:[%s1895_s21 + $0x68] sm:$0xff]  ;;  %v1565_v2 = vld [vmem:[%s2380_s6 + $0x74] sm:$0xf] }
  0x26   : > { %v1505_v9 = vld [vmem:[%s2380_s6 + $0x60] sm:$0xf]  ;;  %v1564_v10 = vld [vmem:[%s2380_s6 + $0x64] sm:$0xf0] }
  0x29   : > { %745 = vmatpush.bf16.msra.mxu1 %v1547_v11  ;;  %v1563_v11 = vld [vmem:[%s2380_s6 + $0x64] sm:$0xf] }
  0x2d   : > { %746 = vmatpush.bf16.msra.mxu1 %v1546_v12  ;;  %v1506_v12 = vor.u32 %v1564_v10, %v1505_v9 }
  0x31   : > { %747 = vmatpush.bf16.msra.mxu1 %v1545_v14  ;;  %v1539_v14 = vld [vmem:[%s1895_s21 + $0x70] sm:$0xff] }
  0x33   : > { %1408 = vmatmul.msk.bf16.gmra.mxu0 %vm472_vm0, %v1526_v3  ;;  %v1514_v3 = vor.u32 %v1566_v1, %v1513_v0 }
  0x35   : > { %748 = vmatpush.bf16.msra.mxu1 %v1544_v15  ;;  %981 = vmatpush.bf16.msra.mxu2 %v1514_v3 }
  0x39   : > { %749 = vmatpush.bf16.msra.mxu1 %v1543_v16  ;;  %982 = vmatpush.bf16.msra.mxu2 %v1506_v12  ;;  %v2072_v12 = vld [vmem:[%s2378_s4] ss:$0 sm:$0xff] }
  0x43   : > { %1409 = vmatmul.msk.bf16.gmra.mxu0 %vm472_vm0, %v1527_v4  ;;  %v1515_v4 = vld [vmem:[%s2380_s6 + $0x78] sm:$0xf0] }
  0x44   : > { %v1518_v7 = vor.u32 %v1565_v2, %v1515_v4 }
  0x46   : > { %1070 = vmatpush.bf16.msra.mxu3 %v1518_v7 }
  0x53   : > { %1410 = vmatmul.msk.bf16.gmra.mxu0 %vm472_vm0, %v1528_v5 }
  0x63   : > { %1411 = vmatmul.msk.bf16.gmra.mxu0 %vm472_vm0, %v1529_v6 }
  0x73   : > { %1412 = vmatmul.msk.bf16.gmra.mxu0 %vm472_vm0, %v1530_v8 }
  0x83   : > { %1413 = vmatmul.msk.bf16.gmra.mxu0 %vm472_vm0, %v1531_v13  ;;  %v1507_v13 = vld [vmem:[%s2380_s6 + $0x68] sm:$0xf0] }
  0x84   : > { %v1510_v15 = vor.u32 %v1563_v11, %v1507_v13 }
  0x86   : > { %1071 = vmatpush.bf16.msra.mxu3 %v1510_v15  ;;  %v2078_v15 = vld [vmem:[%s2379_s5] sm:$0xff] }
  0x93   : > { %1414 = vmatmul.msk.bf16.gmra.mxu0 %vm472_vm0, %v1532_v17  ;;  %v1497_v17 = vld [vmem:[%s2380_s6 + $0x50] sm:$0xf] }
  0xa0   : > { %v530_v19 = vpop.f32.mrf.mxu0 }
  0xa1   : > { %v531_v21 = vadd.f32 %v1938_v20, %v530_v19  ;;  %v1561_v19 = vld [vmem:[%s2380_s6 + $0x54] sm:$0xf] }
  0xa3   : > { %1415 = vmatmul.msk.bf16.gmra.mxu0 %vm472_vm0, %v1533_v18  ;;  %v610_v24 = vmax.f32 %v531_v21, 0.0  ;;  %v1562_v18 = vld [vmem:[%s2380_s6 + $0x54] sm:$0xf0] }
  0xa4   : > { %v1498_v21 = vor.u32 %v1562_v18, %v1497_v17  ;;  %v2083_v17 = vld [vmem:[%s2379_s5 + $0x8] sm:$0xff] }
  0xa6   : > { %983 = vmatpush.bf16.msra.mxu2 %v1498_v21 }
  0xa8   : > { %v532_v22 = vpop.f32.mrf.mxu0 }
  0xa9   : > { %v533_v23 = vadd.f32 %v1938_v20, %v532_v22  ;;  %v1499_v22 = vld [vmem:[%s2380_s6 + $0x58] sm:$0xf0] }
  0xab   : > { %v611_v25 = vmax.f32 %v533_v23, 0.0  ;;  %v1502_v23 = vor.u32 %v1561_v19, %v1499_v22 }
  0xad   : > { %v642_v26 = vpack.c.bf16 %v611_v25, %v610_v24  ;;  %1072 = vmatpush.bf16.msra.mxu3 %v1502_v23  ;;  %v1489_v24 = vld [vmem:[%s2380_s6 + $0x40] sm:$0xf]  ;;  %v1560_v25 = vld [vmem:[%s2380_s6 + $0x44] sm:$0xf0] }
  0xaf   : > { %750 = vmatmul.bf16.vlgmr.msra.gmra.mxu1 %v642_v26  ;;  %v1559_v26 = vld [vmem:[%s2380_s6 + $0x44] sm:$0xf] }
  0xb0   : > { %v535_v28 = vpop.f32.mrf.mxu0 }
  0xb1   : > { %v536_v29 = vadd.f32 %v1938_v20, %v535_v28  ;;  %v1491_v28 = vld [vmem:[%s2380_s6 + $0x48] sm:$0xf0] }
  0xb3   : > { %1416 = vmatmul.msk.bf16.gmra.mxu0 %vm472_vm0, %v1534_v27  ;;  %v612_v32 = vmax.f32 %v536_v29, 0.0  ;;  %v1490_v27 = vor.u32 %v1560_v25, %v1489_v24 }
  0xb5   : > { %984 = vmatpush.bf16.msra.mxu2 %v1490_v27 }
  0xb8   : > { %v537_v30 = vpop.f32.mrf.mxu0 }
  0xb9   : > { %v538_v31 = vadd.f32 %v1938_v20, %v537_v30  ;;  %v1494_v30 = vor.u32 %v1559_v26, %v1491_v28 }
  0xbb   : > { %v613_v33 = vmax.f32 %v538_v31, 0.0  ;;  %1073 = vmatpush.bf16.msra.mxu3 %v1494_v30 }
  0xbd   : > { %v643_v34 = vpack.c.bf16 %v613_v33, %v612_v32  ;;  %v1481_v33 = vld [vmem:[%s2380_s6 + $0x30] sm:$0xf] }
  0xbf   : > { %755 = vmatmul.bf16.gmra.mxu1 %v643_v34  ;;  %v1558_v34 = vld [vmem:[%s2380_s6 + $0x34] sm:$0xf0] }
  0xc0   : > { %v540_v36 = vpop.f32.mrf.mxu0 }
  0xc1   : > { %v541_v37 = vadd.f32 %v1938_v20, %v540_v36  ;;  %v1482_v36 = vor.u32 %v1558_v34, %v1481_v33  ;;  %v2099_v34 = vld [vmem:[%s2379_s5 + $0x18] sm:$0xff] }
  0xc3   : > { %1417 = vmatmul.msk.bf16.gmra.mxu0 %vm472_vm0, %v1535_v35  ;;  %v614_v40 = vmax.f32 %v541_v37, 0.0  ;;  %v1557_v35 = vld [vmem:[%s2380_s6 + $0x34] sm:$0xf]  ;;  %v1483_v37 = vld [vmem:[%s2380_s6 + $0x38] sm:$0xf0]  ;;  %985 = vmatpush.bf16.msra.mxu2 %v1482_v36 }
  0xc8   : > { %v542_v38 = vpop.f32.mrf.mxu0 }
  0xc9   : > { %v543_v39 = vadd.f32 %v1938_v20, %v542_v38 }
  0xcb   : > { %v615_v41 = vmax.f32 %v543_v39, 0.0 }
  0xcd   : > { %v644_v42 = vpack.c.bf16 %v615_v41, %v614_v40  ;;  %v1486_v40 = vor.u32 %v1557_v35, %v1483_v37 }
  0xcf   : > { %760 = vmatmul.bf16.gmra.mxu1 %v644_v42  ;;  %1074 = vmatpush.bf16.msra.mxu3 %v1486_v40  ;;  %v1473_v42 = vld [vmem:[%s2380_s6 + $0x20] sm:$0xf] }
  0xd0   : > { %v545_v44 = vpop.f32.mrf.mxu0 }
  0xd1   : > { %v546_v45 = vadd.f32 %v1938_v20, %v545_v44  ;;  %v1555_v44 = vld [vmem:[%s2380_s6 + $0x24] sm:$0xf] }
  0xd3   : > { %1418 = vmatmul.msk.bf16.gmra.mxu0 %vm472_vm0, %v1536_v43  ;;  %v616_v48 = vmax.f32 %v546_v45, 0.0  ;;  %v1556_v43 = vld [vmem:[%s2380_s6 + $0x24] sm:$0xf0] }
  0xd4   : > { %v1474_v45 = vor.u32 %v1556_v43, %v1473_v42 }
  0xd6   : > { %986 = vmatpush.bf16.msra.mxu2 %v1474_v45 }
  0xd8   : > { %v547_v46 = vpop.f32.mrf.mxu0 }
  0xd9   : > { %v548_v47 = vadd.f32 %v1938_v20, %v547_v46  ;;  %v1475_v46 = vld [vmem:[%s2380_s6 + $0x28] sm:$0xf0] }
  0xdb   : > { %v617_v49 = vmax.f32 %v548_v47, 0.0  ;;  %v1540_v47 = vld [vmem:[%s1895_s21 + $0x78] sm:$0xff]  ;;  %s1239_s21 = sshll.u32 %s1236_s17, 4  ;;  %s1240_s21 = int_to_ptr.hbm [resolvable:$true] %s1239_s21 }
  0xdc   : > { %s1709_s22 = sshra.s32 %s1240_s21, 4  ;;  %s1710_s22 = int_to_ptr.hbm [resolvable:$true] %s1709_s22 }
  0xdd   : > { %v645_v50 = vpack.c.bf16 %v617_v49, %v616_v48  ;;  %v1478_v48 = vor.u32 %v1555_v44, %v1475_v46  ;;  %s1711_s23 = scalar_lea.hbm %s1710_s22, 256  ;;  %p1716_p3 = scmp.lt.s32.totalorder %s1710_s22, %s2382_s8 }
  0xde   : > { %p1712_p0 = scmp.ne.s32.totalorder %s1710_s22, %s1711_s23  ;;  %p1717_p4 = scmp.lt.s32.totalorder %s1715_s10, %s1711_s23 }
  0xdf   : > { %765 = vmatmul.bf16.gmra.mxu1 %v645_v50  ;;  %1075 = vmatpush.bf16.msra.mxu3 %v1478_v48  ;;  %v1465_v50 = vld [vmem:[%s2380_s6 + $0x10] sm:$0xf]  ;;  %v2110_v48 = vld [vmem:[%s2379_s5 + $0x20] sm:$0xff] }
  0xe0   : > { %v550_v52 = vpop.f32.mrf.mxu0  ;;  %p1713_p1 = pnand %p1712_p0, %p1856_p5  ;;  %p1718_p7 = por %p1717_p4, %p1716_p3 }
  0xe1   : > { %v551_v53 = vadd.f32 %v1938_v20, %v550_v52  ;;  %v1553_v52 = vld [vmem:[%s2380_s6 + $0x14] sm:$0xf] }
  0xe2   : > { %p1714_p2 = pneg %p1713_p1 }
  0xe3   : > { %1419 = vmatmul.msk.bf16.gmra.mxu0 %vm472_vm0, %v1537_v51  ;;  %v618_v56 = vmax.f32 %v551_v53, 0.0  ;;  %v1554_v51 = vld [vmem:[%s2380_s6 + $0x14] sm:$0xf0] }
  0xe4   : > { %v1466_v53 = vor.u32 %v1554_v51, %v1465_v50  ;;  %v2115_v50 = vld [vmem:[%s2379_s5 + $0x28] sm:$0xff]  ;;  %p1719_p8 = pnand %p1718_p7, %p1714_p2 }
  0xe6   : > { %987 = vmatpush.bf16.msra.mxu2 %v1466_v53 }
  0xe8   : > { %v552_v54 = vpop.f32.mrf.mxu0 }
  0xe9   : > { %v553_v55 = vadd.f32 %v1938_v20, %v552_v54  ;;  %v1467_v54 = vld [vmem:[%s2380_s6 + $0x18] sm:$0xf0] }
  0xeb   : > { %v619_v57 = vmax.f32 %v553_v55, 0.0  ;;  %v1470_v55 = vor.u32 %v1553_v52, %v1467_v54 }
  0xed   : > { %v646_v58 = vpack.c.bf16 %v619_v57, %v618_v56  ;;  %1076 = vmatpush.bf16.msra.mxu3 %v1470_v55  ;;  %v1457_v56 = vld [vmem:[%s2380_s6] sm:$0xf]  ;;  %v1552_v57 = vld [vmem:[%s2380_s6 + $0x4] sm:$0xf0] }
  0xef   : > { %770 = vmatmul.bf16.gmra.mxu1 %v646_v58  ;;  %v1551_v58 = vld [vmem:[%s2380_s6 + $0x4] sm:$0xf] }
  0xf0   : > { %v555_v60 = vpop.f32.mrf.mxu0 }
  0xf1   : > { %v556_v61 = vadd.f32 %v1938_v20, %v555_v60  ;;  %v1459_v60 = vld [vmem:[%s2380_s6 + $0x8] sm:$0xf0] }
  0xf3   : > { %1420 = vmatmul.msk.bf16.gmra.mxu0 %vm472_vm0, %v1538_v59  ;;  %v620_v5 = vmax.f32 %v556_v61, 0.0  ;;  %v1458_v59 = vor.u32 %v1552_v57, %v1457_v56 }
  0xf5   : > { %988 = vmatpush.bf16.msra.mxu2 %v1458_v59 }
  0xf8   : > { %v557_v62 = vpop.f32.mrf.mxu0 }
  0xf9   : > { %v558_v63 = vadd.f32 %v1938_v20, %v557_v62  ;;  %v1462_v62 = vor.u32 %v1551_v58, %v1459_v60 }
  0xfb   : > { %v621_v6 = vmax.f32 %v558_v63, 0.0  ;;  %1077 = vmatpush.bf16.msra.mxu3 %v1462_v62 }
  0xfd   : > { %v647_v8 = vpack.c.bf16 %v621_v6, %v620_v5 }
  0xff   : > { %775 = vmatmul.bf16.gmra.mxu1 %v647_v8 }
 0x100   : > { %v560_v16 = vpop.f32.mrf.mxu0 }
 0x101   : > { %v561_v29 = vadd.f32 %v1938_v20, %v560_v16 }
 0x103   : > { %1421 = vmatmul.msk.bf16.gmra.mxu0 %vm472_vm0, %v1539_v14  ;;  %v622_v38 = vmax.f32 %v561_v29, 0.0 }
 0x108   : > { %v562_v31 = vpop.f32.mrf.mxu0 }
 0x109   : > { %v563_v32 = vadd.f32 %v1938_v20, %v562_v31 }
 0x10b   : > { %v623_v39 = vmax.f32 %v563_v32, 0.0  ;;  %v2094_v32 = vld [vmem:[%s2379_s5 + $0x10] sm:$0xff] }
 0x10d   : > { %v648_v41 = vpack.c.bf16 %v623_v39, %v622_v38 }
 0x10f   : > { %780 = vmatmul.bf16.gmra.mxu1 %v648_v41 }
 0x110   : > { %v565_v49 = vpop.f32.mrf.mxu0 }
 0x111   : > { %v566_v61 = vadd.f32 %v1938_v20, %v565_v49 }
 0x113   : > { %1422 = vmatmul.msk.bf16.gmra.mxu0 %vm472_vm0, %v1540_v47  ;;  %v624_v1 = vmax.f32 %v566_v61, 0.0 }
 0x118   : > { %v567_v63 = vpop.f32.mrf.mxu0 }
 0x119   : > { %v568_v0 = vadd.f32 %v1938_v20, %v567_v63 }
 0x11b   : > { %v625_v2 = vmax.f32 %v568_v0, 0.0  ;;  %v2126_v0 = vld [vmem:[%s2379_s5 + $0x30] sm:$0xff] }
 0x11d   : > { %v649_v3 = vpack.c.bf16 %v625_v2, %v624_v1  ;;  %v2131_v2 = vld [vmem:[%s2379_s5 + $0x38] sm:$0xff] }
 0x11f   : > { %785 = vmatmul.bf16.gmra.mxu1 %v649_v3 }
 0x120   : > { %v570_v4 = vpop.f32.mrf.mxu0 }
 0x121   : > { %v571_v5 = vadd.f32 %v1938_v20, %v570_v4 }
 0x123   : > { %v626_v8 = vmax.f32 %v571_v5, 0.0 }
 0x128   : > { %v572_v6 = vpop.f32.mrf.mxu0 }
 0x129   : > { %v573_v7 = vadd.f32 %v1938_v20, %v572_v6 }
 0x12b   : > { %v627_v9 = vmax.f32 %v573_v7, 0.0 }
 0x12c   : > { %v751_v10 = vpop.f32.mrf.mxu1 }
 0x12d   : > { %v650_v11 = vpack.c.bf16 %v627_v9, %v626_v8  ;;  %v752_v14 = vadd.f32 %v2072_v12, %v751_v10 }
 0x12f   : > { %790 = vmatmul.bf16.gmra.mxu1 %v650_v11  ;;  %v831_v19 = vadd.f32 %v752_v14, %v2078_v15 }
 0x130   : > { %v575_v13 = vpop.f32.mrf.mxu0 }
 0x131   : > { %v576_v21 = vadd.f32 %v1938_v20, %v575_v13 }
 0x133   : > { %v628_v26 = vmax.f32 %v576_v21, 0.0  ;;  %v2147_v21 = vld [vmem:[%s2379_s5 + $0x48] sm:$0xff] }
 0x134   : > { %v753_v16 = vpop.f32.mrf.mxu1 }
 0x135   : > { %v754_v18 = vadd.f32 %v2072_v12, %v753_v16 }
 0x137   : > { %v832_v22 = vadd.f32 %v754_v18, %v2083_v17 }
 0x138   : > { %v577_v23 = vpop.f32.mrf.mxu0 }
 0x139   : > { %v578_v24 = vadd.f32 %v1938_v20, %v577_v23  ;;  %v863_v25 = vpack.c.bf16 %v832_v22, %v831_v19  ;;  %v2142_v19 = vld [vmem:[%s2379_s5 + $0x40] sm:$0xff] }
 0x13b   : > { %v629_v27 = vmax.f32 %v578_v24, 0.0  ;;  %989 = vmatmul.bf16.vlgmr.msra.gmra.mxu2 %v863_v25  ;;  %1078 = vmatmul.bf16.vlgmr.msra.gmra.mxu3 %v863_v25 }
 0x13c   : > { %v756_v28 = vpop.f32.mrf.mxu1 }
 0x13d   : > { %v651_v29 = vpack.c.bf16 %v629_v27, %v628_v26  ;;  %v757_v31 = vadd.f32 %v2072_v12, %v756_v28 }
 0x13f   : > { %795 = vmatmul.bf16.gmra.mxu1 %v651_v29  ;;  %v833_v36 = vadd.f32 %v757_v31, %v2094_v32 }
 0x140   : > { %v580_v30 = vpop.f32.mrf.mxu0 }
 0x141   : > { %v581_v37 = vadd.f32 %v1938_v20, %v580_v30 }
 0x143   : > { %v630_v42 = vmax.f32 %v581_v37, 0.0 }
 0x144   : > { %v758_v33 = vpop.f32.mrf.mxu1 }
 0x145   : > { %v759_v35 = vadd.f32 %v2072_v12, %v758_v33 }
 0x147   : > { %v834_v38 = vadd.f32 %v759_v35, %v2099_v34 }
 0x148   : > { %v582_v39 = vpop.f32.mrf.mxu0 }
 0x149   : > { %v583_v40 = vadd.f32 %v1938_v20, %v582_v39  ;;  %v864_v41 = vpack.c.bf16 %v834_v38, %v833_v36  ;;  %v2158_v38 = vld [vmem:[%s2379_s5 + $0x50] sm:$0xff]  ;;  %v2163_v39 = vld [vmem:[%s2379_s5 + $0x58] sm:$0xff] }
 0x14b   : > { %v631_v43 = vmax.f32 %v583_v40, 0.0  ;;  %994 = vmatmul.bf16.gmra.mxu2 %v864_v41  ;;  %1083 = vmatmul.bf16.gmra.mxu3 %v864_v41 }
 0x14c   : > { %v761_v44 = vpop.f32.mrf.mxu1 }
 0x14d   : > { %v652_v45 = vpack.c.bf16 %v631_v43, %v630_v42  ;;  %v762_v47 = vadd.f32 %v2072_v12, %v761_v44 }
 0x14f   : > { %800 = vmatmul.bf16.gmra.mxu1 %v652_v45  ;;  %v835_v52 = vadd.f32 %v762_v47, %v2110_v48 }
 0x150   : > { %v585_v46 = vpop.f32.mrf.mxu0 }
 0x151   : > { %v586_v53 = vadd.f32 %v1938_v20, %v585_v46 }
 0x153   : > { %v632_v58 = vmax.f32 %v586_v53, 0.0 }
 0x154   : > { %v763_v49 = vpop.f32.mrf.mxu1 }
 0x155   : > { %v764_v51 = vadd.f32 %v2072_v12, %v763_v49 }
 0x157   : > { %v836_v54 = vadd.f32 %v764_v51, %v2115_v50 }
 0x158   : > { %v587_v55 = vpop.f32.mrf.mxu0 }
 0x159   : > { %v588_v56 = vadd.f32 %v1938_v20, %v587_v55  ;;  %v865_v57 = vpack.c.bf16 %v836_v54, %v835_v52 }
 0x15b   : > { %v633_v59 = vmax.f32 %v588_v56, 0.0  ;;  %999 = vmatmul.bf16.gmra.mxu2 %v865_v57  ;;  %1088 = vmatmul.bf16.gmra.mxu3 %v865_v57  ;;  %v2174_v56 = vld [vmem:[%s2379_s5 + $0x60] sm:$0xff]  ;;  %v2179_v57 = vld [vmem:[%s2379_s5 + $0x68] sm:$0xff] }
 0x15c   : > { %v766_v60 = vpop.f32.mrf.mxu1 }
 0x15d   : > { %v653_v61 = vpack.c.bf16 %v633_v59, %v632_v58  ;;  %v767_v63 = vadd.f32 %v2072_v12, %v766_v60 }
 0x15f   : > { %805 = vmatmul.bf16.gmra.mxu1 %v653_v61  ;;  %v837_v4 = vadd.f32 %v767_v63, %v2126_v0 }
 0x160   : > { %v590_v62 = vpop.f32.mrf.mxu0 }
 0x161   : > { %v591_v5 = vadd.f32 %v1938_v20, %v590_v62 }
 0x163   : > { %v634_v10 = vmax.f32 %v591_v5, 0.0 }
 0x164   : > { %v768_v1 = vpop.f32.mrf.mxu1 }
 0x165   : > { %v769_v3 = vadd.f32 %v2072_v12, %v768_v1 }
 0x167   : > { %v838_v6 = vadd.f32 %v769_v3, %v2131_v2 }
 0x168   : > { %v592_v7 = vpop.f32.mrf.mxu0 }
 0x169   : > { %v593_v8 = vadd.f32 %v1938_v20, %v592_v7  ;;  %v866_v9 = vpack.c.bf16 %v838_v6, %v837_v4 }
 0x16b   : > { %v635_v11 = vmax.f32 %v593_v8, 0.0  ;;  %1004 = vmatmul.bf16.gmra.mxu2 %v866_v9  ;;  %1093 = vmatmul.bf16.gmra.mxu3 %v866_v9  ;;  %v2190_v9 = vld [vmem:[%s2379_s5 + $0x70] sm:$0xff] }
 0x16c   : > { %v771_v13 = vpop.f32.mrf.mxu1 }
 0x16d   : > { %v654_v14 = vpack.c.bf16 %v635_v11, %v634_v10  ;;  %v772_v18 = vadd.f32 %v2072_v12, %v771_v13  ;;  %v2195_v10 = vld [vmem:[%s2379_s5 + $0x78] sm:$0xff] }
 0x16f   : > { %810 = vmatmul.bf16.gmra.mxu1 %v654_v14  ;;  %v839_v24 = vadd.f32 %v772_v18, %v2142_v19 }
 0x170   : > { %v595_v16 = vpop.f32.mrf.mxu0 }
 0x171   : > { %v596_v25 = vadd.f32 %v1938_v20, %v595_v16 }
 0x173   : > { %v636_v30 = vmax.f32 %v596_v25, 0.0 }
 0x174   : > { %v773_v22 = vpop.f32.mrf.mxu1 }
 0x175   : > { %v774_v23 = vadd.f32 %v2072_v12, %v773_v22 }
 0x177   : > { %v840_v26 = vadd.f32 %v774_v23, %v2147_v21 }
 0x178   : > { %v597_v27 = vpop.f32.mrf.mxu0 }
 0x179   : > { %v598_v28 = vadd.f32 %v1938_v20, %v597_v27  ;;  %v867_v29 = vpack.c.bf16 %v840_v26, %v839_v24  ;;  %v895_v27 = vld [vmem:[%s2381_s7] sm:$0x3] }
 0x17b   : > { %v637_v31 = vmax.f32 %v598_v28, 0.0  ;;  %1009 = vmatmul.bf16.gmra.mxu2 %v867_v29  ;;  %1098 = vmatmul.bf16.gmra.mxu3 %v867_v29  ;;  %v2208_v29 = vperm.slane %v895_v27, 0 }
 0x17c   : > { %v776_v33 = vpop.f32.mrf.mxu1 }
 0x17d   : > { %v655_v35 = vpack.c.bf16 %v637_v31, %v636_v30  ;;  %v777_v37 = vadd.f32 %v2072_v12, %v776_v33  ;;  %v2210_v30 = vperm.slane %v895_v27, 1 }
 0x17f   : > { %815 = vmatmul.bf16.gmra.mxu1 %v655_v35  ;;  %v841_v42 = vadd.f32 %v777_v37, %v2158_v38 }
 0x180   : > { %v600_v36 = vpop.f32.mrf.mxu0 }
 0x181   : > { %v601_v43 = vadd.f32 %v1938_v20, %v600_v36 }
 0x183   : > { %v638_v49 = vmax.f32 %v601_v43, 0.0 }
 0x184   : > { %v778_v40 = vpop.f32.mrf.mxu1 }
 0x185   : > { %v779_v41 = vadd.f32 %v2072_v12, %v778_v40 }
 0x187   : > { %v842_v44 = vadd.f32 %v779_v41, %v2163_v39 }
 0x188   : > { %v602_v45 = vpop.f32.mrf.mxu0 }
 0x189   : > { %v603_v46 = vadd.f32 %v1938_v20, %v602_v45  ;;  %v868_v47 = vpack.c.bf16 %v842_v44, %v841_v42 }
 0x18b   : > { %v639_v51 = vmax.f32 %v603_v46, 0.0  ;;  %1014 = vmatmul.bf16.gmra.mxu2 %v868_v47  ;;  %1103 = vmatmul.bf16.gmra.mxu3 %v868_v47 }
 0x18c   : > { %v781_v52 = vpop.f32.mrf.mxu1 }
 0x18d   : > { %v656_v53 = vpack.c.bf16 %v639_v51, %v638_v49  ;;  %v782_v55 = vadd.f32 %v2072_v12, %v781_v52 }
 0x18f   : > { %820 = vmatmul.bf16.gmra.mxu1 %v656_v53  ;;  %v843_v60 = vadd.f32 %v782_v55, %v2174_v56 }
 0x190   : > { %v605_v54 = vpop.f32.mrf.mxu0 }
 0x191   : > { %v606_v61 = vadd.f32 %v1938_v20, %v605_v54 }
 0x193   : > { %v640_v4 = vmax.f32 %v606_v61, 0.0 }
 0x194   : > { %v783_v58 = vpop.f32.mrf.mxu1 }
 0x195   : > { %v784_v59 = vadd.f32 %v2072_v12, %v783_v58 }
 0x197   : > { %v844_v62 = vadd.f32 %v784_v59, %v2179_v57 }
 0x198   : > { %v607_v63 = vpop.f32.mrf.mxu0 }
 0x199   : > { %v608_v1 = vadd.f32 %v1938_v20, %v607_v63  ;;  %v869_v3 = vpack.c.bf16 %v844_v62, %v843_v60 }
 0x19b   : > { %v641_v5 = vmax.f32 %v608_v1, 0.0  ;;  %1019 = vmatmul.bf16.gmra.mxu2 %v869_v3  ;;  %1108 = vmatmul.bf16.gmra.mxu3 %v869_v3 }
 0x19c   : > { %v786_v6 = vpop.f32.mrf.mxu1 }
 0x19d   : > { %v657_v7 = vpack.c.bf16 %v641_v5, %v640_v4  ;;  %v787_v8 = vadd.f32 %v2072_v12, %v786_v6 }
 0x19f   : > { %825 = vmatmul.bf16.gmra.mxu1 %v657_v7  ;;  %v845_v13 = vadd.f32 %v787_v8, %v2190_v9 }
 0x1a4   : > { %v788_v20 = vpop.f32.mrf.mxu1 }
 0x1a5   : > { %v789_v11 = vadd.f32 %v2072_v12, %v788_v20 }
 0x1a7   : > { %v846_v14 = vadd.f32 %v789_v11, %v2195_v10 }
 0x1a9   : > { %v870_v16 = vpack.c.bf16 %v846_v14, %v845_v13 }
 0x1ab   : > { %1024 = vmatmul.bf16.gmra.mxu2 %v870_v16  ;;  %1113 = vmatmul.bf16.gmra.mxu3 %v870_v16 }
 0x1ac   : > { %v791_v18 = vpop.f32.mrf.mxu1 }
 0x1ad   : > { %v792_v22 = vadd.f32 %v2072_v12, %v791_v18 }
 0x1af   : > { %v847_v25 = vadd.f32 %v792_v22, %v2078_v15 }
 0x1b4   : > { %v793_v23 = vpop.f32.mrf.mxu1 }
 0x1b5   : > { %v794_v24 = vadd.f32 %v2072_v12, %v793_v23 }
 0x1b7   : > { %v848_v26 = vadd.f32 %v794_v24, %v2083_v17 }
 0x1b9   : > { %v871_v28 = vpack.c.bf16 %v848_v26, %v847_v25 }
 0x1bb   : > { %1029 = vmatmul.bf16.gmra.mxu2 %v871_v28  ;;  %1118 = vmatmul.bf16.gmra.mxu3 %v871_v28 }
 0x1bc   : > { %v796_v31 = vpop.f32.mrf.mxu1 }
 0x1bd   : > { %v797_v37 = vadd.f32 %v2072_v12, %v796_v31 }
 0x1be   : > { %v990_v33 = vpop.f32.mrf.mxu2  ;;  %v1079_v35 = vpop.f32.mrf.mxu3 }
 0x1bf   : > { %v991_v15 = vadd.f32 %v990_v33, %v2208_v29  ;;  %v1080_v17 = vadd.f32 %v1079_v35, %v2210_v30  ;;  %v849_v44 = vadd.f32 %v797_v37, %v2094_v32 }
 0x1c1   : > { %v1159_v36 = vpack.c.bf16 %v1080_v17, %v991_v15 }
 0x1c3   : > { %1191 = vst [vmem:[%s2217_s12] sm:$0xff] %v1159_v36 }
 0x1c4   : > { %v798_v40 = vpop.f32.mrf.mxu1 }
 0x1c5   : > { %v799_v41 = vadd.f32 %v2072_v12, %v798_v40 }
 0x1c6   : > { %v992_v42 = vpop.f32.mrf.mxu2  ;;  %v1081_v43 = vpop.f32.mrf.mxu3 }
 0x1c7   : > { %v850_v45 = vadd.f32 %v799_v41, %v2099_v34  ;;  %v993_v46 = vadd.f32 %v992_v42, %v2208_v29  ;;  %v1082_v47 = vadd.f32 %v1081_v43, %v2210_v30 }
 0x1c9   : > { %v1160_v49 = vpack.c.bf16 %v1082_v47, %v993_v46  ;;  %v872_v51 = vpack.c.bf16 %v850_v45, %v849_v44 }
 0x1cb   : > { %1192 = vst [vmem:[%s2217_s12 + $0x8] sm:$0xff] %v1160_v49  ;;  %1034 = vmatmul.bf16.gmra.mxu2 %v872_v51  ;;  %1123 = vmatmul.bf16.gmra.mxu3 %v872_v51 }
 0x1cc   : > { %v801_v52 = vpop.f32.mrf.mxu1 }
 0x1cd   : > { %v802_v34 = vadd.f32 %v2072_v12, %v801_v52 }
 0x1ce   : > { %v995_v53 = vpop.f32.mrf.mxu2  ;;  %v1084_v54 = vpop.f32.mrf.mxu3 }
 0x1cf   : > { %v996_v55 = vadd.f32 %v995_v53, %v2208_v29  ;;  %v1085_v32 = vadd.f32 %v1084_v54, %v2210_v30  ;;  %v851_v63 = vadd.f32 %v802_v34, %v2110_v48 }
 0x1d1   : > { %v1161_v58 = vpack.c.bf16 %v1085_v32, %v996_v55 }
 0x1d3   : > { %1193 = vst [vmem:[%s2217_s12 + $0x10] sm:$0xff] %v1161_v58 }
 0x1d4   : > { %v803_v59 = vpop.f32.mrf.mxu1 }
 0x1d5   : > { %v804_v60 = vadd.f32 %v2072_v12, %v803_v59 }
 0x1d6   : > { %v997_v61 = vpop.f32.mrf.mxu2  ;;  %v1086_v62 = vpop.f32.mrf.mxu3 }
 0x1d7   : > { %v852_v1 = vadd.f32 %v804_v60, %v2115_v50  ;;  %v998_v3 = vadd.f32 %v997_v61, %v2208_v29  ;;  %v1087_v4 = vadd.f32 %v1086_v62, %v2210_v30 }
 0x1d9   : > { %v1162_v5 = vpack.c.bf16 %v1087_v4, %v998_v3  ;;  %v873_v6 = vpack.c.bf16 %v852_v1, %v851_v63 }
 0x1db   : > { %1194 = vst [vmem:[%s2217_s12 + $0x18] sm:$0xff] %v1162_v5  ;;  %1039 = vmatmul.bf16.gmra.mxu2 %v873_v6  ;;  %1128 = vmatmul.bf16.gmra.mxu3 %v873_v6 }
 0x1dc   : > { %v806_v7 = vpop.f32.mrf.mxu1 }
 0x1dd   : > { %v807_v50 = vadd.f32 %v2072_v12, %v806_v7 }
 0x1de   : > { %v1000_v8 = vpop.f32.mrf.mxu2  ;;  %v1089_v20 = vpop.f32.mrf.mxu3 }
 0x1df   : > { %v1001_v11 = vadd.f32 %v1000_v8, %v2208_v29  ;;  %v1090_v48 = vadd.f32 %v1089_v20, %v2210_v30  ;;  %v853_v23 = vadd.f32 %v807_v50, %v2126_v0 }
 0x1e1   : > { %v1163_v13 = vpack.c.bf16 %v1090_v48, %v1001_v11 }
 0x1e3   : > { %1195 = vst [vmem:[%s2217_s12 + $0x20] sm:$0xff] %v1163_v13 }
 0x1e4   : > { %v808_v14 = vpop.f32.mrf.mxu1 }
 0x1e5   : > { %v809_v16 = vadd.f32 %v2072_v12, %v808_v14 }
 0x1e6   : > { %v1002_v18 = vpop.f32.mrf.mxu2  ;;  %v1091_v22 = vpop.f32.mrf.mxu3 }
 0x1e7   : > { %v854_v24 = vadd.f32 %v809_v16, %v2131_v2  ;;  %v1003_v25 = vadd.f32 %v1002_v18, %v2208_v29  ;;  %v1092_v26 = vadd.f32 %v1091_v22, %v2210_v30 }
 0x1e9   : > { %v1164_v27 = vpack.c.bf16 %v1092_v26, %v1003_v25  ;;  %v874_v28 = vpack.c.bf16 %v854_v24, %v853_v23 }
 0x1eb   : > { %1196 = vst [vmem:[%s2217_s12 + $0x28] sm:$0xff] %v1164_v27  ;;  %1044 = vmatmul.bf16.gmra.mxu2 %v874_v28  ;;  %1133 = vmatmul.bf16.gmra.mxu3 %v874_v28 }
 0x1ec   : > { %v811_v31 = vpop.f32.mrf.mxu1 }
 0x1ed   : > { %v812_v2 = vadd.f32 %v2072_v12, %v811_v31 }
 0x1ee   : > { %v1005_v33 = vpop.f32.mrf.mxu2  ;;  %v1094_v35 = vpop.f32.mrf.mxu3 }
 0x1ef   : > { %v1006_v15 = vadd.f32 %v1005_v33, %v2208_v29  ;;  %v1095_v0 = vadd.f32 %v1094_v35, %v2210_v30  ;;  %v855_v42 = vadd.f32 %v812_v2, %v2142_v19 }
 0x1f1   : > { %v1165_v17 = vpack.c.bf16 %v1095_v0, %v1006_v15 }
 0x1f3   : > { %1197 = vst [vmem:[%s2217_s12 + $0x30] sm:$0xff] %v1165_v17 }
 0x1f4   : > { %v813_v36 = vpop.f32.mrf.mxu1 }
 0x1f5   : > { %v814_v37 = vadd.f32 %v2072_v12, %v813_v36 }
 0x1f6   : > { %v1007_v40 = vpop.f32.mrf.mxu2  ;;  %v1096_v41 = vpop.f32.mrf.mxu3 }
 0x1f7   : > { %v856_v43 = vadd.f32 %v814_v37, %v2147_v21  ;;  %v1008_v44 = vadd.f32 %v1007_v40, %v2208_v29  ;;  %v1097_v45 = vadd.f32 %v1096_v41, %v2210_v30 }
 0x1f9   : > { %v1166_v46 = vpack.c.bf16 %v1097_v45, %v1008_v44  ;;  %v875_v47 = vpack.c.bf16 %v856_v43, %v855_v42 }
 0x1fb   : > { %1198 = vst [vmem:[%s2217_s12 + $0x38] sm:$0xff] %v1166_v46  ;;  %1049 = vmatmul.bf16.gmra.mxu2 %v875_v47  ;;  %1138 = vmatmul.bf16.gmra.mxu3 %v875_v47 }
 0x1fc   : > { %v816_v49 = vpop.f32.mrf.mxu1 }
 0x1fd   : > { %v817_v21 = vadd.f32 %v2072_v12, %v816_v49 }
 0x1fe   : > { %v1010_v51 = vpop.f32.mrf.mxu2  ;;  %v1099_v52 = vpop.f32.mrf.mxu3 }
 0x1ff   : > { %v1011_v53 = vadd.f32 %v1010_v51, %v2208_v29  ;;  %v1100_v19 = vadd.f32 %v1099_v52, %v2210_v30  ;;  %v857_v59 = vadd.f32 %v817_v21, %v2158_v38 }
 0x201   : > { %v1167_v54 = vpack.c.bf16 %v1100_v19, %v1011_v53 }
 0x203   : > { %1199 = vst [vmem:[%s2217_s12 + $0x40] sm:$0xff] %v1167_v54 }
 0x204   : > { %v818_v55 = vpop.f32.mrf.mxu1 }
 0x205   : > { %v819_v32 = vadd.f32 %v2072_v12, %v818_v55 }
 0x206   : > { %v1012_v58 = vpop.f32.mrf.mxu2  ;;  %v1101_v34 = vpop.f32.mrf.mxu3 }
 0x207   : > { %v858_v60 = vadd.f32 %v819_v32, %v2163_v39  ;;  %v1013_v61 = vadd.f32 %v1012_v58, %v2208_v29  ;;  %v1102_v62 = vadd.f32 %v1101_v34, %v2210_v30 }
 0x209   : > { %v1168_v63 = vpack.c.bf16 %v1102_v62, %v1013_v61  ;;  %v876_v1 = vpack.c.bf16 %v858_v60, %v857_v59 }
 0x20b   : > { %1200 = vst [vmem:[%s2217_s12 + $0x48] sm:$0xff] %v1168_v63  ;;  %1054 = vmatmul.bf16.gmra.mxu2 %v876_v1  ;;  %1143 = vmatmul.bf16.gmra.mxu3 %v876_v1 }
 0x20c   : > { %v821_v3 = vpop.f32.mrf.mxu1 }
 0x20d   : > { %v822_v39 = vadd.f32 %v2072_v12, %v821_v3 }
 0x20e   : > { %v1015_v4 = vpop.f32.mrf.mxu2  ;;  %v1104_v5 = vpop.f32.mrf.mxu3 }
 0x20f   : > { %v1016_v6 = vadd.f32 %v1015_v4, %v2208_v29  ;;  %v1105_v38 = vadd.f32 %v1104_v5, %v2210_v30  ;;  %v859_v13 = vadd.f32 %v822_v39, %v2174_v56 }
 0x211   : > { %v1169_v7 = vpack.c.bf16 %v1105_v38, %v1016_v6 }
 0x213   : > { %1201 = vst [vmem:[%s2217_s12 + $0x50] sm:$0xff] %v1169_v7 }
 0x214   : > { %v823_v8 = vpop.f32.mrf.mxu1 }
 0x215   : > { %v824_v20 = vadd.f32 %v2072_v12, %v823_v8 }
 0x216   : > { %v1017_v11 = vpop.f32.mrf.mxu2  ;;  %v1106_v48 = vpop.f32.mrf.mxu3 }
 0x217   : > { %v860_v50 = vadd.f32 %v824_v20, %v2179_v57  ;;  %v1018_v14 = vadd.f32 %v1017_v11, %v2208_v29  ;;  %v1107_v16 = vadd.f32 %v1106_v48, %v2210_v30 }
 0x219   : > { %v1170_v18 = vpack.c.bf16 %v1107_v16, %v1018_v14  ;;  %v877_v22 = vpack.c.bf16 %v860_v50, %v859_v13 }
 0x21b   : > { %1202 = vst [vmem:[%s2217_s12 + $0x58] sm:$0xff] %v1170_v18  ;;  %1059 = vmatmul.bf16.gmra.mxu2 %v877_v22  ;;  %1148 = vmatmul.bf16.gmra.mxu3 %v877_v22 }
 0x21c   : > { %v826_v23 = vpop.f32.mrf.mxu1 }
 0x21d   : > { %v827_v57 = vadd.f32 %v2072_v12, %v826_v23 }
 0x21e   : > { %v1020_v24 = vpop.f32.mrf.mxu2  ;;  %v1109_v25 = vpop.f32.mrf.mxu3 }
 0x21f   : > { %v1021_v26 = vadd.f32 %v1020_v24, %v2208_v29  ;;  %v1110_v56 = vadd.f32 %v1109_v25, %v2210_v30  ;;  %v861_v15 = vadd.f32 %v827_v57, %v2190_v9 }
 0x221   : > { %v1171_v27 = vpack.c.bf16 %v1110_v56, %v1021_v26 }
 0x223   : > { %1203 = vst [vmem:[%s2217_s12 + $0x60] sm:$0xff] %v1171_v27 }
 0x224   : > { %v828_v28 = vpop.f32.mrf.mxu1 }
 0x225   : > { %v829_v31 = vadd.f32 %v2072_v12, %v828_v28 }
 0x226   : > { %v1022_v33 = vpop.f32.mrf.mxu2  ;;  %v1111_v35 = vpop.f32.mrf.mxu3 }
 0x227   : > { %v862_v0 = vadd.f32 %v829_v31, %v2195_v10  ;;  %v1023_v17 = vadd.f32 %v1022_v33, %v2208_v29  ;;  %v1112_v2 = vadd.f32 %v1111_v35, %v2210_v30 }
 0x229   : > { %v1172_v36 = vpack.c.bf16 %v1112_v2, %v1023_v17  ;;  %v878_v37 = vpack.c.bf16 %v862_v0, %v861_v15 }
 0x22b   : > { %1204 = vst [vmem:[%s2217_s12 + $0x68] sm:$0xff] %v1172_v36  ;;  %1064 = vmatmul.bf16.gmra.mxu2 %v878_v37  ;;  %1153 = vmatmul.bf16.gmra.mxu3 %v878_v37 }
 0x22e   : > { %v1025_v40 = vpop.f32.mrf.mxu2  ;;  %v1114_v41 = vpop.f32.mrf.mxu3 }
 0x22f   : > { %v1026_v12 = vadd.f32 %v1025_v40, %v2208_v29  ;;  %v1115_v42 = vadd.f32 %v1114_v41, %v2210_v30 }
 0x231   : > { %v1173_v9 = vpack.c.bf16 %v1115_v42, %v1026_v12 }
 0x233   : > { %1205 = vst [vmem:[%s2217_s12 + $0x70] sm:$0xff] %v1173_v9 }
 0x236   : > { %v1027_v10 = vpop.f32.mrf.mxu2  ;;  %v1116_v43 = vpop.f32.mrf.mxu3 }
 0x237   : > { %v1028_v44 = vadd.f32 %v1027_v10, %v2208_v29  ;;  %v1117_v45 = vadd.f32 %v1116_v43, %v2210_v30 }
 0x239   : > { %v1174_v46 = vpack.c.bf16 %v1117_v45, %v1028_v44 }
 0x23b   : > { %1206 = vst [vmem:[%s2217_s12 + $0x78] sm:$0xff] %v1174_v46 }
 0x23e   : > { %v1030_v47 = vpop.f32.mrf.mxu2  ;;  %v1119_v49 = vpop.f32.mrf.mxu3 }
 0x23f   : > { %v1031_v51 = vadd.f32 %v1030_v47, %v2208_v29  ;;  %v1120_v52 = vadd.f32 %v1119_v49, %v2210_v30 }
 0x241   : > { %v1175_v53 = vpack.c.bf16 %v1120_v52, %v1031_v51 }
 0x243   : > { %1207 = vst [vmem:[%s2217_s12 + $0x80] sm:$0xff] %v1175_v53 }
 0x246   : > { %v1032_v19 = vpop.f32.mrf.mxu2  ;;  %v1121_v54 = vpop.f32.mrf.mxu3 }
 0x247   : > { %v1033_v21 = vadd.f32 %v1032_v19, %v2208_v29  ;;  %v1122_v55 = vadd.f32 %v1121_v54, %v2210_v30 }
 0x249   : > { %v1176_v32 = vpack.c.bf16 %v1122_v55, %v1033_v21 }
 0x24b   : > { %1208 = vst [vmem:[%s2217_s12 + $0x88] sm:$0xff] %v1176_v32 }
 0x24e   : > { %v1035_v58 = vpop.f32.mrf.mxu2  ;;  %v1124_v34 = vpop.f32.mrf.mxu3 }
 0x24f   : > { %v1036_v59 = vadd.f32 %v1035_v58, %v2208_v29  ;;  %v1125_v60 = vadd.f32 %v1124_v34, %v2210_v30 }
 0x251   : > { %v1177_v61 = vpack.c.bf16 %v1125_v60, %v1036_v59 }
 0x253   : > { %1209 = vst [vmem:[%s2217_s12 + $0x90] sm:$0xff] %v1177_v61 }
 0x256   : > { %v1037_v62 = vpop.f32.mrf.mxu2  ;;  %v1126_v63 = vpop.f32.mrf.mxu3 }
 0x257   : > { %v1038_v1 = vadd.f32 %v1037_v62, %v2208_v29  ;;  %v1127_v3 = vadd.f32 %v1126_v63, %v2210_v30 }
 0x259   : > { %v1178_v4 = vpack.c.bf16 %v1127_v3, %v1038_v1 }
 0x25b   : > { %1210 = vst [vmem:[%s2217_s12 + $0x98] sm:$0xff] %v1178_v4 }
 0x25e   : > { %v1040_v5 = vpop.f32.mrf.mxu2  ;;  %v1129_v6 = vpop.f32.mrf.mxu3 }
 0x25f   : > { %v1041_v38 = vadd.f32 %v1040_v5, %v2208_v29  ;;  %v1130_v7 = vadd.f32 %v1129_v6, %v2210_v30 }
 0x261   : > { %v1179_v39 = vpack.c.bf16 %v1130_v7, %v1041_v38 }
 0x263   : > { %1211 = vst [vmem:[%s2217_s12 + $0xa0] sm:$0xff] %v1179_v39 }
 0x266   : > { %v1042_v8 = vpop.f32.mrf.mxu2  ;;  %v1131_v20 = vpop.f32.mrf.mxu3 }
 0x267   : > { %v1043_v11 = vadd.f32 %v1042_v8, %v2208_v29  ;;  %v1132_v48 = vadd.f32 %v1131_v20, %v2210_v30 }
 0x269   : > { %v1180_v13 = vpack.c.bf16 %v1132_v48, %v1043_v11 }
 0x26b   : > { %1212 = vst [vmem:[%s2217_s12 + $0xa8] sm:$0xff] %v1180_v13 }
 0x26e   : > { %v1045_v50 = vpop.f32.mrf.mxu2  ;;  %v1134_v14 = vpop.f32.mrf.mxu3 }
 0x26f   : > { %v1046_v16 = vadd.f32 %v1045_v50, %v2208_v29  ;;  %v1135_v18 = vadd.f32 %v1134_v14, %v2210_v30 }
 0x271   : > { %v1181_v22 = vpack.c.bf16 %v1135_v18, %v1046_v16 }
 0x273   : > { %1213 = vst [vmem:[%s2217_s12 + $0xb0] sm:$0xff] %v1181_v22 }
 0x276   : > { %v1047_v23 = vpop.f32.mrf.mxu2  ;;  %v1136_v24 = vpop.f32.mrf.mxu3 }
 0x277   : > { %v1048_v25 = vadd.f32 %v1047_v23, %v2208_v29  ;;  %v1137_v26 = vadd.f32 %v1136_v24, %v2210_v30 }
 0x279   : > { %v1182_v56 = vpack.c.bf16 %v1137_v26, %v1048_v25 }
 0x27b   : > { %1214 = vst [vmem:[%s2217_s12 + $0xb8] sm:$0xff] %v1182_v56 }
 0x27e   : > { %v1050_v27 = vpop.f32.mrf.mxu2  ;;  %v1139_v57 = vpop.f32.mrf.mxu3 }
 0x27f   : > { %v1051_v28 = vadd.f32 %v1050_v27, %v2208_v29  ;;  %v1140_v31 = vadd.f32 %v1139_v57, %v2210_v30 }
 0x281   : > { %v1183_v33 = vpack.c.bf16 %v1140_v31, %v1051_v28 }
 0x283   : > { %1215 = vst [vmem:[%s2217_s12 + $0xc0] sm:$0xff] %v1183_v33 }
 0x286   : > { %v1052_v35 = vpop.f32.mrf.mxu2  ;;  %v1141_v15 = vpop.f32.mrf.mxu3 }
 0x287   : > { %v1053_v0 = vadd.f32 %v1052_v35, %v2208_v29  ;;  %v1142_v17 = vadd.f32 %v1141_v15, %v2210_v30 }
 0x289   : > { %v1184_v2 = vpack.c.bf16 %v1142_v17, %v1053_v0 }
 0x28b   : > { %1216 = vst [vmem:[%s2217_s12 + $0xc8] sm:$0xff] %v1184_v2 }
 0x28e   : > { %v1055_v36 = vpop.f32.mrf.mxu2  ;;  %v1144_v37 = vpop.f32.mrf.mxu3 }
 0x28f   : > { %v1056_v40 = vadd.f32 %v1055_v36, %v2208_v29  ;;  %v1145_v41 = vadd.f32 %v1144_v37, %v2210_v30 }
 0x291   : > { %v1185_v12 = vpack.c.bf16 %v1145_v41, %v1056_v40 }
 0x293   : > { %1217 = vst [vmem:[%s2217_s12 + $0xd0] sm:$0xff] %v1185_v12 }
 0x296   : > { %v1057_v42 = vpop.f32.mrf.mxu2  ;;  %v1146_v9 = vpop.f32.mrf.mxu3 }
 0x297   : > { %v1058_v10 = vadd.f32 %v1057_v42, %v2208_v29  ;;  %v1147_v43 = vadd.f32 %v1146_v9, %v2210_v30 }
 0x299   : > { %v1186_v44 = vpack.c.bf16 %v1147_v43, %v1058_v10 }
 0x29b   : > { %1218 = vst [vmem:[%s2217_s12 + $0xd8] sm:$0xff] %v1186_v44 }
 0x29e   : > { %v1060_v45 = vpop.f32.mrf.mxu2  ;;  %v1149_v46 = vpop.f32.mrf.mxu3 }
 0x29f   : > { %v1061_v47 = vadd.f32 %v1060_v45, %v2208_v29  ;;  %v1150_v49 = vadd.f32 %v1149_v46, %v2210_v30 }
 0x2a1   : > { %v1187_v51 = vpack.c.bf16 %v1150_v49, %v1061_v47 }
 0x2a3   : > { %1219 = vst [vmem:[%s2217_s12 + $0xe0] sm:$0xff] %v1187_v51 }
 0x2a6   : > { %v1062_v52 = vpop.f32.mrf.mxu2  ;;  %v1151_v53 = vpop.f32.mrf.mxu3 }
 0x2a7   : > { %v1063_v19 = vadd.f32 %v1062_v52, %v2208_v29  ;;  %v1152_v54 = vadd.f32 %v1151_v53, %v2210_v30 }
 0x2a9   : > { %v1188_v21 = vpack.c.bf16 %v1152_v54, %v1063_v19 }
 0x2ab   : > { %1220 = vst [vmem:[%s2217_s12 + $0xe8] sm:$0xff] %v1188_v21 }
 0x2ae   : > { %v1065_v55 = vpop.f32.mrf.mxu2  ;;  %v1154_v32 = vpop.f32.mrf.mxu3 }
 0x2af   : > { %v1066_v58 = vadd.f32 %v1065_v55, %v2208_v29  ;;  %v1155_v34 = vadd.f32 %v1154_v32, %v2210_v30 }
 0x2b1   : > { %v1189_v59 = vpack.c.bf16 %v1155_v34, %v1066_v58 }
 0x2b3   : > { %1221 = vst [vmem:[%s2217_s12 + $0xf0] sm:$0xff] %v1189_v59 }
 0x2b6   : > { %v1067_v60 = vpop.f32.mrf.mxu2  ;;  %v1156_v61 = vpop.f32.mrf.mxu3 }
 0x2b7   : > { %v1068_v62 = vadd.f32 %v1067_v60, %v2208_v29  ;;  %v1157_v63 = vadd.f32 %v1156_v61, %v2210_v30 }
 0x2b9   : > { %v1190_v1 = vpack.c.bf16 %v1157_v63, %v1068_v62 }
 0x2bb   : > { %1222 = vst [vmem:[%s2217_s12 + $0xf8] sm:$0xff] %v1190_v1 }
 0x2bc   : > { %1722 = shalt.err (!%p1719_p8)
}
 0x2bd   : > { %s1771_s26 = smov 128   ;;  %s1772_s12 = smov 8  }
 0x2be   : > { %1577 = dma.vmem_to_hbm [thread:$0]  (%p1856_p5), %s1238_s20, 4096, %s1240_s21, %s1224_s9, %s1771_s26, %s1771_s26, %s1772_s12  }
 0x2bf PF: > { %p1594_p9 = scmp.ge.s32.totalorder %s1765_s30, 2  ;;  %s1254_s19 = sand.u32 1, %s1753_s27  }
 0x2c0   : > { %s1255_s17 = scalar_lea.sflag [#allocation4], %s1254_s19 }
 0x2c1   : > { %p1587_p10 = pnand %p1594_p9, %p1860_p6 }
 0x2c3   : > { %p1588_p11 = pneg %p1587_p10 }
 0x2c5   : > { %1748 = dma.done.wait (%p1588_p11), %s1255_s17, 4096  }
 0x2c6   : > { %1750 = vsyncadd (%p1588_p11), %s1255_s17, 4294963200  ;;  %p20_p12 = scmp.ge.s32.totalorder %s1843_s11, 4   ;;  %s2386_s27 = smov %s1757_s28 }
 0x2c7   : > { %s2387_s28 = smov %s1761_s29  ;;  %s2388_s29 = smov %s1854_s14 }
 0x2c8   : > { %s2389_s30 = smov %s1843_s11  ;;  %22 = sbr.rel (!%p20_p12) target bundleno = 5 (0x5), region = 96 }
 0x2cd   :  { %1261 = vsyncpa [#allocation3], 1 }
 0x2ce   :  { %1263 = vsyncpa [#allocation3 + $0x1], 1 }
 0x2cf   :  { %1264 = vsyncpa [#allocation6], 1 }
 0x2d0   :  { %1265 = vsyncpa [#allocation4], 1 }
 0x2d1   :  { %1267 = vsyncpa [#allocation4 + $0x1], 1 }

</bundles_post_ra>
